<compile_context>
chip_gen: v7x
topology: tpu7x:2x2x1
jax: 0.10.0
libtpu: 0.0.40
codegen_flags: <defaults>
</compile_context>

<pallas_src>
import functools

import jax
import jax.numpy as jnp
from jax import lax
from jax.experimental import pallas as pl
from jax.experimental.pallas import tpu as pltpu

LANE = 128          # output-channel padding target (lane width)
K_ALIGN = 16        # bf16 sublane packing alignment for contraction dims
SUBLANE = 8
MAX_TILE_M = 256    # rows per grid step (keeps working set small on v5e/v7x)
TARGET_STEPS = 8    # aim for >= this many grid steps (pipelining + 2 TCs)


def _round_up(x, m):
    return ((x + m - 1) // m) * m


def _cdiv(a, b):
    return -(-a // b)


def _pick_tile_m(m_rows):
    tile = _round_up(_cdiv(m_rows, TARGET_STEPS), SUBLANE)
    return max(SUBLANE, min(MAX_TILE_M, tile))


def _vmem_limit_bytes(*byte_counts):
    est = int(sum(int(b) for b in byte_counts))
    # Generous 2x margin, floored at 32 MiB (>= all scoped defaults) and
    # capped below v7x's 64 MiB physical VMEM.
    return int(min(56 * 2**20, max(32 * 2**20, 2 * est + (2 << 20))))


def _pad_to(a, shape):
    pads = [(0, t - s) for s, t in zip(a.shape, shape)]
    return jnp.pad(a, pads) if any(p[1] for p in pads) else a


# ----------------------------- Pallas kernels -----------------------------

def _accumulate_taps(acc_ref, xwin_ref, w_ref, shifts, tile_m):
    """Accumulate the 9 taps of a 3x3 / stride-1 conv.

    xwin_ref holds a [tile_m + halo, Cpk] row window of the guarded,
    flattened activation.  Each tap is a full-window matmul whose f32 result
    is row-shifted before accumulation, so every VMEM access stays aligned;
    the halo rows cost ~halo/tile_m extra MXU work, which is cheap next to
    the HBM traffic removed by not materializing im2col.
    """
    xw = xwin_ref[...]
    for t, sh in enumerate(shifts):
        y = jnp.dot(xw, w_ref[t], preferred_element_type=jnp.float32)
        acc_ref[...] += y[sh:sh + tile_m, :]


def _conv3x3_relu_kernel(x_hbm, w_ref, b_ref, o_ref, xwin, sem, acc,
                         *, shifts, tile_m, tile_m_ext):
    start = pl.multiple_of(pl.program_id(0) * tile_m, SUBLANE)
    cp = pltpu.make_async_copy(x_hbm.at[pl.ds(start, tile_m_ext), :], xwin,
                               sem.at[0])
    cp.start()
    acc[...] = jnp.zeros_like(acc)                    # overlaps the window DMA
    cp.wait()
    _accumulate_taps(acc, xwin, w_ref, shifts, tile_m)
    o_ref[...] = jnp.maximum(acc[...] + b_ref[...], 0.0).astype(o_ref.dtype)


def _conv3x3_addskip_relu_kernel(x_hbm, skip_ref, w_ref, b_ref, o_ref,
                                 xwin, sem, acc,
                                 *, shifts, tile_m, tile_m_ext):
    start = pl.multiple_of(pl.program_id(0) * tile_m, SUBLANE)
    cp = pltpu.make_async_copy(x_hbm.at[pl.ds(start, tile_m_ext), :], xwin,
                               sem.at[0])
    cp.start()
    acc[...] = skip_ref[...].astype(jnp.float32)      # fused identity residual
    cp.wait()
    _accumulate_taps(acc, xwin, w_ref, shifts, tile_m)
    o_ref[...] = jnp.maximum(acc[...] + b_ref[...], 0.0).astype(o_ref.dtype)


def _conv3x3_convskip_relu_kernel(x_hbm, xs_ref, w_ref, ws_ref, b_ref, o_ref,
                                  xwin, sem, acc,
                                  *, shifts, tile_m, tile_m_ext):
    start = pl.multiple_of(pl.program_id(0) * tile_m, SUBLANE)
    cp = pltpu.make_async_copy(x_hbm.at[pl.ds(start, tile_m_ext), :], xwin,
                               sem.at[0])
    cp.start()
    # Fused 1x1-conv (downsample) skip branch: shares the f32 accumulator and
    # a single combined bias; its matmul overlaps the window DMA.
    acc[...] = jnp.dot(xs_ref[...], ws_ref[...],
                       preferred_element_type=jnp.float32)
    cp.wait()
    _accumulate_taps(acc, xwin, w_ref, shifts, tile_m)
    o_ref[...] = jnp.maximum(acc[...] + b_ref[...], 0.0).astype(o_ref.dtype)


def _mm_bias_relu_kernel(x_ref, w_ref, b_ref, o_ref):
    # im2col fallback for the strided conv1: out = relu(cols @ w' + b)
    acc = jnp.dot(x_ref[...], w_ref[...], preferred_element_type=jnp.float32)
    o_ref[...] = jnp.maximum(acc + b_ref[...], 0.0).astype(o_ref.dtype)


# ------------------------------ BN folding ---------------------------------

def fold_bn(gamma, beta, mean, var, eps=1e-5):
    scale = gamma / jnp.sqrt(var + eps)
    bias = beta - mean * scale
    return scale.reshape(1, -1), bias.reshape(1, -1)


# ----------------------- stride-1 3x3 conv launcher -------------------------

def _conv3x3_s1(x_nhwc, w_hwio, scale, bias_row, cout_p,
                skip_mode="none", skip_x=None, skip_w2d=None, skip_scale=None):
    """3x3 / stride-1 / pad-1 conv + folded-BN bias (+fused skip) + ReLU.

    x_nhwc  : [N, H, W, Ca] bf16 activation (Ca >= true Cin, extras are 0).
    w_hwio  : [3, 3, Cin, Cout] f32 conv weight.
    scale   : [1, Cout] f32 folded BN scale (multiplied into the weight).
    bias_row: [1, cout_p] f32 folded bias (already b2 + b_skip for 'conv').
    skip_mode: 'none' | 'add' (identity residual) | 'conv' (1x1-conv residual).
    Returns [N, H, W, cout_p] bf16.
    """
    N, H, W, Ca = x_nhwc.shape
    Cin, Cout = w_hwio.shape[2], w_hwio.shape[3]
    cpk = _round_up(Ca, K_ALIGN)
    Hp, Wp = H + 2, W + 2
    m_rows = N * Hp * Wp
    tile_m = _pick_tile_m(m_rows)
    mp = _round_up(m_rows, tile_m)
    halo = _round_up(2 * Wp + 2, SUBLANE)
    tile_m_ext = tile_m + halo
    shifts = tuple(kh * Wp + kw for kh in range(3) for kw in range(3))

    # Guarded flattened activation: [Wp+1 zero rows | spatially padded image
    # rows | zero tail].  Output row r (flattened over N x Hp x Wp padded
    # coordinates) reads guarded rows r + kh*Wp + kw; rows outside the valid
    # interior are garbage and get sliced off after the kernel.
    xpad = jnp.pad(x_nhwc, ((0, 0), (1, 1), (1, 1), (0, cpk - Ca)))
    lead = Wp + 1
    xg = jnp.pad(xpad.reshape(m_rows, cpk),
                 ((lead, mp + halo - lead - m_rows), (0, 0)))

    # BN scale folded into the weights; taps stacked on the leading axis.
    w = w_hwio.reshape(9, Cin, Cout) * scale.reshape(1, 1, Cout)
    w = _pad_to(w, (9, cpk, cout_p)).astype(jnp.bfloat16)

    args = [xg]
    in_specs = [pl.BlockSpec(memory_space=pl.ANY)]
    skip_bytes = ws_bytes = extra_flops = 0
    kern_kwargs = dict(shifts=shifts, tile_m=tile_m, tile_m_ext=tile_m_ext)

    if skip_mode == "add":
        Cs = skip_x.shape[-1]
        sk = jnp.pad(skip_x, ((0, 0), (1, 1), (1, 1), (0, cout_p - Cs)))
        sk = _pad_to(sk.reshape(m_rows, cout_p), (mp, cout_p))
        args.append(sk)
        in_specs.append(pl.BlockSpec((tile_m, cout_p), lambda i: (i, 0)))
        skip_bytes = 2 * tile_m * cout_p * 2
        kernel = functools.partial(_conv3x3_addskip_relu_kernel, **kern_kwargs)
    elif skip_mode == "conv":
        Cs = skip_x.shape[-1]
        cs_pk = _round_up(Cs, K_ALIGN)
        sk = jnp.pad(skip_x, ((0, 0), (1, 1), (1, 1), (0, cs_pk - Cs)))
        sk = _pad_to(sk.reshape(m_rows, cs_pk), (mp, cs_pk))
        args.append(sk)
        in_specs.append(pl.BlockSpec((tile_m, cs_pk), lambda i: (i, 0)))
        skip_bytes = 2 * tile_m * cs_pk * 2
        extra_flops = 2 * mp * cs_pk * cout_p
        kernel = functools.partial(_conv3x3_convskip_relu_kernel, **kern_kwargs)
    else:
        kernel = functools.partial(_conv3x3_relu_kernel, **kern_kwargs)

    args.append(w)
    in_specs.append(pl.BlockSpec((9, cpk, cout_p), lambda i: (0, 0, 0)))

    if skip_mode == "conv":
        ws = skip_w2d * skip_scale
        ws = _pad_to(ws, (cs_pk, cout_p)).astype(jnp.bfloat16)
        args.append(ws)
        in_specs.append(pl.BlockSpec((cs_pk, cout_p), lambda i: (0, 0)))
        ws_bytes = 2 * cs_pk * cout_p * 2

    args.append(bias_row)
    in_specs.append(pl.BlockSpec((1, cout_p), lambda i: (0, 0)))

    n_blocks = mp // tile_m
    flops = 2 * n_blocks * 9 * tile_m_ext * cpk * cout_p + extra_flops
    bytes_accessed = sum(int(a.size) * a.dtype.itemsize for a in args) \
        + mp * cout_p * 2
    vmem_limit = _vmem_limit_bytes(
        2 * tile_m * cout_p * 2,            # bf16 output (double buffered)
        skip_bytes, ws_bytes,               # skip operands
        2 * 9 * cpk * cout_p * 2,           # resident weights (2 slots)
        2 * cout_p * 4,                     # resident bias
        tile_m_ext * cpk * 2,               # window scratch
        tile_m * cout_p * 4,                # f32 accumulator
        3 * tile_m_ext * cout_p * 4,        # per-tap matmul temporaries
    )

    out = pl.pallas_call(
        kernel,
        out_shape=jax.ShapeDtypeStruct((mp, cout_p), jnp.bfloat16),
        grid_spec=pltpu.PrefetchScalarGridSpec(
            num_scalar_prefetch=0,
            grid=(n_blocks,),
            in_specs=in_specs,
            out_specs=pl.BlockSpec((tile_m, cout_p), lambda i: (i, 0)),
            scratch_shapes=[
                pltpu.VMEM((tile_m_ext, cpk), jnp.bfloat16),
                pltpu.SemaphoreType.DMA((1,)),
                pltpu.VMEM((tile_m, cout_p), jnp.float32),
            ]),
        compiler_params=pltpu.CompilerParams(
            dimension_semantics=("parallel",),
            vmem_limit_bytes=vmem_limit),
        cost_estimate=pl.CostEstimate(
            flops=int(flops), transcendentals=0,
            bytes_accessed=int(bytes_accessed)),
    )(*args)

    return out[:m_rows].reshape(N, Hp, Wp, cout_p)[:, 1:H + 1, 1:W + 1, :]


# --------------------- strided conv1 (im2col fallback) ----------------------

def im2col(x_nhwc, ksize, stride, padding):
    N, H, W, C = x_nhwc.shape
    xp = jnp.pad(x_nhwc, ((0, 0), (padding, padding), (padding, padding), (0, 0)))
    Ho = (H + 2 * padding - ksize) // stride + 1
    Wo = (W + 2 * padding - ksize) // stride + 1
    patches = []
    for kh in range(ksize):
        for kw in range(ksize):
            patches.append(
                xp[:, kh:kh + Ho * stride:stride, kw:kw + Wo * stride:stride, :])
    cols = jnp.concatenate(patches, axis=-1)
    return cols.reshape(N * Ho * Wo, ksize * ksize * C), (N, Ho, Wo)


def _conv_im2col_relu(x_nhwc, w_hwio, scale, bias_row, cout_p, stride):
    """Strided 3x3 conv + folded BN + ReLU via (bf16) im2col matmul."""
    ksize, _, Cin, Cout = w_hwio.shape
    cols, (N, Ho, Wo) = im2col(x_nhwc, ksize, stride, 1)   # bf16 patches
    M, K = cols.shape
    Kp = _round_up(K, K_ALIGN)
    tile_m = _pick_tile_m(M)
    Mp = _round_up(M, tile_m)
    cols = _pad_to(cols, (Mp, Kp))
    w = w_hwio.reshape(K, Cout) * scale
    w = _pad_to(w, (Kp, cout_p)).astype(jnp.bfloat16)

    bytes_accessed = cols.size * 2 + w.size * 2 + bias_row.size * 4 \
        + Mp * cout_p * 2
    vmem_limit = _vmem_limit_bytes(
        2 * tile_m * Kp * 2, 2 * Kp * cout_p * 2,
        2 * cout_p * 4, 2 * tile_m * cout_p * 2, tile_m * cout_p * 4)

    out = pl.pallas_call(
        _mm_bias_relu_kernel,
        out_shape=jax.ShapeDtypeStruct((Mp, cout_p), jnp.bfloat16),
        grid_spec=pltpu.PrefetchScalarGridSpec(
            num_scalar_prefetch=0,
            grid=(Mp // tile_m,),
            in_specs=[pl.BlockSpec((tile_m, Kp), lambda i: (i, 0)),
                      pl.BlockSpec((Kp, cout_p), lambda i: (0, 0)),
                      pl.BlockSpec((1, cout_p), lambda i: (0, 0))],
            out_specs=pl.BlockSpec((tile_m, cout_p), lambda i: (i, 0))),
        compiler_params=pltpu.CompilerParams(
            dimension_semantics=("parallel",),
            vmem_limit_bytes=vmem_limit),
        cost_estimate=pl.CostEstimate(
            flops=2 * Mp * Kp * cout_p, transcendentals=0,
            bytes_accessed=int(bytes_accessed)),
    )(cols, w, bias_row)
    return out[:M].reshape(N, Ho, Wo, cout_p)


# ------------------------------ parameters ----------------------------------

def init_basic_block_params(key, inchannel, outchannel, stride):
    """Deterministic synthetic parameters matching BasicBlock.__init__ shapes."""
    ks = jax.random.split(key, 16)
    p = {}
    p["w1"] = 0.1 * jax.random.normal(ks[0], (3, 3, inchannel, outchannel), jnp.float32)
    p["w2"] = 0.1 * jax.random.normal(ks[1], (3, 3, outchannel, outchannel), jnp.float32)
    p["bn1"] = (1.0 + 0.1 * jax.random.normal(ks[2], (outchannel,), jnp.float32),
                0.1 * jax.random.normal(ks[3], (outchannel,), jnp.float32),
                0.1 * jax.random.normal(ks[4], (outchannel,), jnp.float32),
                1.0 + 0.1 * jax.random.uniform(ks[5], (outchannel,), jnp.float32))
    p["bn2"] = (1.0 + 0.1 * jax.random.normal(ks[6], (outchannel,), jnp.float32),
                0.1 * jax.random.normal(ks[7], (outchannel,), jnp.float32),
                0.1 * jax.random.normal(ks[8], (outchannel,), jnp.float32),
                1.0 + 0.1 * jax.random.uniform(ks[9], (outchannel,), jnp.float32))
    # Skip-conv presence is encoded in the pytree STRUCTURE (static under jit).
    if (stride > 1) or (inchannel != outchannel):
        p["ws"] = 0.1 * jax.random.normal(ks[10], (1, 1, inchannel, outchannel), jnp.float32)
        p["bns"] = (1.0 + 0.1 * jax.random.normal(ks[11], (outchannel,), jnp.float32),
                    0.1 * jax.random.normal(ks[12], (outchannel,), jnp.float32),
                    0.1 * jax.random.normal(ks[13], (outchannel,), jnp.float32),
                    1.0 + 0.1 * jax.random.uniform(ks[14], (outchannel,), jnp.float32))
    return p


# ------------------------------ forward -------------------------------------

@functools.partial(jax.jit, static_argnames=("stride",))
def basic_block_forward(x_nchw, params, stride):
    """Pallas-backed BasicBlock forward. Input/output are NCHW like PyTorch."""
    x = jnp.transpose(x_nchw, (0, 2, 3, 1)).astype(jnp.bfloat16)  # NHWC, bf16
    N, H, W, Cin = x.shape
    Cout = params["w1"].shape[-1]
    cout_p = _round_up(Cout, LANE)
    has_skip_conv = "ws" in params   # static: depends only on pytree structure

    s1, b1 = fold_bn(*params["bn1"])
    s2, b2 = fold_bn(*params["bn2"])
    b1_row = _pad_to(b1, (1, cout_p))

    # ---- conv1 (3x3, stride, pad 1) + bn1 + relu ----
    if stride == 1:
        out1 = _conv3x3_s1(x, params["w1"], s1, b1_row, cout_p)
    else:
        out1 = _conv_im2col_relu(x, params["w1"], s1, b1_row, cout_p, stride)

    # conv2 consumes out1 with channels trimmed to a 16-aligned width; the
    # extra (zero) channels pair with zero-padded weight rows.
    cpk2 = _round_up(Cout, K_ALIGN)
    x2 = out1[..., :cpk2]

    # ---- conv2 (3x3, stride 1, pad 1) + bn2 + skip + relu (one fused kernel)
    if has_skip_conv:
        ss, bs = fold_bn(*params["bns"])
        bias2 = _pad_to(b2 + bs, (1, cout_p))          # combined bias
        xs = x[:, ::stride, ::stride, :]               # 1x1 / stride-s sampling
        out2 = _conv3x3_s1(x2, params["w2"], s2, bias2, cout_p,
                           skip_mode="conv", skip_x=xs,
                           skip_w2d=params["ws"].reshape(Cin, Cout),
                           skip_scale=ss)
    else:
        assert stride == 1 and Cin == Cout, "identity skip needs stride=1, Cin==Cout"
        bias2 = _pad_to(b2, (1, cout_p))
        out2 = _conv3x3_s1(x2, params["w2"], s2, bias2, cout_p,
                           skip_mode="add", skip_x=x)

    out = out2[..., :Cout]
    return jnp.transpose(out, (0, 3, 1, 2)).astype(x_nchw.dtype)


# ----------------------------- reference (pure JAX) --------------------------

def _reference_forward(x_nchw, params, stride):
    x = jnp.transpose(x_nchw, (0, 2, 3, 1)).astype(jnp.float32)

    def conv(inp, w, strd, pad):
        return lax.conv_general_dilated(
            inp, w, window_strides=(strd, strd),
            padding=((pad, pad), (pad, pad)),
            dimension_numbers=("NHWC", "HWIO", "NHWC"))

    def bn(inp, prm):
        g, b, m, v = prm
        return (inp - m) / jnp.sqrt(v + 1e-5) * g + b

    out = jax.nn.relu(bn(conv(x, params["w1"], stride, 1), params["bn1"]))
    out = bn(conv(out, params["w2"], 1, 1), params["bn2"])
    if "ws" in params:
        skip = bn(conv(x, params["ws"], stride, 0), params["bns"])
    else:
        skip = x
    out = jax.nn.relu(out + skip)
    return jnp.transpose(out, (0, 3, 1, 2))


# --------------------------------- main --------------------------------------

if __name__ == "__main__":
    key = jax.random.PRNGKey(0)
    configs = [
        # (batch, inchannel, outchannel, spatial, stride)
        (2, 4, 8, 16, 2),   # downsample path: strided conv1 + fused 1x1 skip
        (2, 8, 8, 16, 1),   # identity path: tap kernels + fused identity skip
    ]
    for idx, (batch, cin, cout, spatial, stride) in enumerate(configs):
        k_x, k_p = jax.random.split(jax.random.fold_in(key, idx))
        x = jax.random.normal(k_x, (batch, cin, spatial, spatial), jnp.float32)
        params = init_basic_block_params(k_p, cin, cout, stride)

        out = jax.block_until_ready(basic_block_forward(x, params, stride))
        ref = jax.block_until_ready(_reference_forward(x, params, stride))

        assert out.shape == ref.shape, f"shape mismatch in config {idx}"
        # bf16 operands/intermediates (f32 accumulation) -> loosened tolerance.
        assert jnp.allclose(out, ref, atol=3e-2, rtol=3e-2), \
            f"mismatch vs reference in config {idx}"

    print("KERNEL_OK")
</pallas_src>

<mosaic_0001>
module attributes {stable_mosaic.version = 11 : i64} {
  func.func @_mm_bias_relu_kernel(%arg0: i32, %arg1: memref<16x48xbf16, #tpu.memory_space<vmem>>, %arg2: memref<48x128xbf16, #tpu.memory_space<vmem>>, %arg3: memref<1x128xf32, #tpu.memory_space<vmem>>, %arg4: memref<16x128xbf16, #tpu.memory_space<vmem>>) attributes {dimension_semantics = [#tpu.dimension_semantics<parallel>], iteration_bounds = array<i64: 8>, scalar_prefetch = 0 : i64, scratch_operands = 0 : i64, tpu.core_type = #tpu.core_type<tc>, window_params = [{transform_indices = @transform_0, window_bounds = array<i64: 16, 48>}, {pipeline_mode = #tpu.pipeline_mode<synchronous>, transform_indices = @transform_1, window_bounds = array<i64: 48, 128>}, {pipeline_mode = #tpu.pipeline_mode<synchronous>, transform_indices = @transform_2, window_bounds = array<i64: 1, 128>}, {transform_indices = @transform_3, window_bounds = array<i64: 16, 128>}]} {
    %c0 = arith.constant 0 : index
    %c0_0 = arith.constant 0 : index
    %0 = vector.load %arg1[%c0, %c0_0] : memref<16x48xbf16, #tpu.memory_space<vmem>>, vector<16x48xbf16>
    %c0_1 = arith.constant 0 : index
    %c0_2 = arith.constant 0 : index
    %1 = vector.load %arg2[%c0_1, %c0_2] : memref<48x128xbf16, #tpu.memory_space<vmem>>, vector<48x128xbf16>
    %cst = arith.constant dense<0.000000e+00> : vector<16x128xf32>
    %2 = tpu.matmul %0, %1, %cst {dimension_numbers = #tpu.dot_dimension_numbers<[1], [0], [0], [1], [0, 0, 1, 1], [], []>} : vector<16x48xbf16>, vector<48x128xbf16>, vector<16x128xf32> -> vector<16x128xf32>
    %c0_3 = arith.constant 0 : index
    %c0_4 = arith.constant 0 : index
    %3 = vector.load %arg3[%c0_3, %c0_4] : memref<1x128xf32, #tpu.memory_space<vmem>>, vector<1x128xf32>
    %4 = vector.broadcast %3 : vector<1x128xf32> to vector<16x128xf32>
    %5 = arith.addf %2, %4 : vector<16x128xf32>
    %cst_5 = arith.constant 0.000000e+00 : f32
    %6 = vector.broadcast %cst_5 : f32 to vector<16x128xf32>
    %7 = arith.maximumf %5, %6 : vector<16x128xf32>
    %8 = arith.truncf %7 : vector<16x128xf32> to vector<16x128xbf16>
    %c0_6 = arith.constant 0 : index
    %c0_7 = arith.constant 0 : index
    %9 = vector.load %arg4[%c0_6, %c0_7] : memref<16x128xbf16, #tpu.memory_space<vmem>>, vector<16x128xbf16>
    tpu.vector_store %arg4[%c0_6, %c0_7], %8 {strides = array<i32>} : memref<16x128xbf16, #tpu.memory_space<vmem>>, vector<16x128xbf16>,
    return
  }
  func.func @transform_0(%arg0: i32) -> (i32, i32) {
    %c0_i32 = arith.constant 0 : i32
    %c0_i32_0 = arith.constant 0 : i32
    return %arg0, %c0_i32 : i32, i32
  }
  func.func @transform_1(%arg0: i32) -> (i32, i32) {
    %c0_i32 = arith.constant 0 : i32
    %c0_i32_0 = arith.constant 0 : i32
    %c0_i32_1 = arith.constant 0 : i32
    return %c0_i32, %c0_i32_0 : i32, i32
  }
  func.func @transform_2(%arg0: i32) -> (i32, i32) {
    %c0_i32 = arith.constant 0 : i32
    %c0_i32_0 = arith.constant 0 : i32
    %c0_i32_1 = arith.constant 0 : i32
    return %c0_i32, %c0_i32_0 : i32, i32
  }
  func.func @transform_3(%arg0: i32) -> (i32, i32) {
    %c0_i32 = arith.constant 0 : i32
    %c0_i32_0 = arith.constant 0 : i32
    return %arg0, %c0_i32 : i32, i32
  }
}

module attributes {stable_mosaic.version = 11 : i64} {
  func.func @_conv3x3_convskip_relu_kernel(%arg0: i32, %arg1: memref<248x16xbf16, #tpu.memory_space<any>>, %arg2: memref<32x16xbf16, #tpu.memory_space<vmem>>, %arg3: memref<9x16x128xbf16, #tpu.memory_space<vmem>>, %arg4: memref<16x128xbf16, #tpu.memory_space<vmem>>, %arg5: memref<1x128xf32, #tpu.memory_space<vmem>>, %arg6: memref<32x128xbf16, #tpu.memory_space<vmem>>, %arg7: memref<56x16xbf16, #tpu.memory_space<vmem>>, %arg8: memref<1x!tpu.dma_semaphore, #tpu.memory_space<semaphore_mem>>, %arg9: memref<32x128xf32, #tpu.memory_space<vmem>>) attributes {dimension_semantics = [#tpu.dimension_semantics<parallel>], iteration_bounds = array<i64: 7>, scalar_prefetch = 0 : i64, scratch_operands = 3 : i64, tpu.core_type = #tpu.core_type<tc>, window_params = [{}, {transform_indices = @transform_1, window_bounds = array<i64: 32, 16>}, {pipeline_mode = #tpu.pipeline_mode<synchronous>, transform_indices = @transform_2, window_bounds = array<i64: 9, 16, 128>}, {pipeline_mode = #tpu.pipeline_mode<synchronous>, transform_indices = @transform_3, window_bounds = array<i64: 16, 128>}, {pipeline_mode = #tpu.pipeline_mode<synchronous>, transform_indices = @transform_4, window_bounds = array<i64: 1, 128>}, {transform_indices = @transform_5, window_bounds = array<i64: 32, 128>}]} {
    %c32_i32 = arith.constant 32 : i32
    %0 = arith.muli %arg0, %c32_i32 : i32
    %1 = tpu.assume_multiple %0, 8 : i32
    %c0_i32 = arith.constant 0 : i32
    %c0_i32_0 = arith.constant 0 : i32
    %2 = tpu.memref_slice %arg1[%1, %c0_i32_0] : memref<248x16xbf16, #tpu.memory_space<any>> -> memref<56x16xbf16, #tpu.memory_space<any>>
    %3 = tpu.memref_slice %arg8[%c0_i32] : memref<1x!tpu.dma_semaphore, #tpu.memory_space<semaphore_mem>> -> memref<1x!tpu.dma_semaphore, #tpu.memory_space<semaphore_mem>>
    %4 = tpu.memref_squeeze %3 : memref<1x!tpu.dma_semaphore, #tpu.memory_space<semaphore_mem>> -> memref<!tpu.dma_semaphore, #tpu.memory_space<semaphore_mem>>
    tpu.enqueue_dma source(%2 : memref<56x16xbf16, #tpu.memory_space<any>>) target(%arg7 : memref<56x16xbf16, #tpu.memory_space<vmem>>) target_semaphore(%4 : memref<!tpu.dma_semaphore, #tpu.memory_space<semaphore_mem>>)
    %c0 = arith.constant 0 : index
    %c0_1 = arith.constant 0 : index
    %5 = vector.load %arg2[%c0, %c0_1] : memref<32x16xbf16, #tpu.memory_space<vmem>>, vector<32x16xbf16>
    %c0_2 = arith.constant 0 : index
    %c0_3 = arith.constant 0 : index
    %6 = vector.load %arg4[%c0_2, %c0_3] : memref<16x128xbf16, #tpu.memory_space<vmem>>, vector<16x128xbf16>
    %cst = arith.constant dense<0.000000e+00> : vector<32x128xf32>
    %7 = tpu.matmul %5, %6, %cst {dimension_numbers = #tpu.dot_dimension_numbers<[1], [0], [0], [1], [0, 0, 1, 1], [], []>} : vector<32x16xbf16>, vector<16x128xbf16>, vector<32x128xf32> -> vector<32x128xf32>
    %c0_4 = arith.constant 0 : index
    %c0_5 = arith.constant 0 : index
    %8 = vector.load %arg9[%c0_4, %c0_5] : memref<32x128xf32, #tpu.memory_space<vmem>>, vector<32x128xf32>
    tpu.vector_store %arg9[%c0_4, %c0_5], %7 {strides = array<i32>} : memref<32x128xf32, #tpu.memory_space<vmem>>, vector<32x128xf32>,
    %c0_i32_6 = arith.constant 0 : i32
    %c0_i32_7 = arith.constant 0 : i32
    %9 = tpu.memref_slice %arg1[%1, %c0_i32_7] : memref<248x16xbf16, #tpu.memory_space<any>> -> memref<56x16xbf16, #tpu.memory_space<any>>
    %10 = tpu.memref_slice %arg8[%c0_i32_6] : memref<1x!tpu.dma_semaphore, #tpu.memory_space<semaphore_mem>> -> memref<1x!tpu.dma_semaphore, #tpu.memory_space<semaphore_mem>>
    %11 = tpu.memref_squeeze %10 : memref<1x!tpu.dma_semaphore, #tpu.memory_space<semaphore_mem>> -> memref<!tpu.dma_semaphore, #tpu.memory_space<semaphore_mem>>
    tpu.wait_dma2 semaphore(%11 : memref<!tpu.dma_semaphore, #tpu.memory_space<semaphore_mem>>) src(%9 : memref<56x16xbf16, #tpu.memory_space<any>>) dst(%arg7 : memref<56x16xbf16, #tpu.memory_space<vmem>>)
    %c0_8 = arith.constant 0 : index
    %c0_9 = arith.constant 0 : index
    %12 = vector.load %arg7[%c0_8, %c0_9] : memref<56x16xbf16, #tpu.memory_space<vmem>>, vector<56x16xbf16>
    %c0_10 = arith.constant 0 : index
    %c0_11 = arith.constant 0 : index
    %c0_12 = arith.constant 0 : index
    %13 = vector.load %arg3[%c0_10, %c0_11, %c0_12] : memref<9x16x128xbf16, #tpu.memory_space<vmem>>, vector<1x16x128xbf16>
    %14 = vector.shape_cast %13 : vector<1x16x128xbf16> to vector<16x128xbf16>
    %cst_13 = arith.constant dense<0.000000e+00> : vector<56x128xf32>
    %15 = tpu.matmul %12, %14, %cst_13 {dimension_numbers = #tpu.dot_dimension_numbers<[1], [0], [0], [1], [0, 0, 1, 1], [], []>} : vector<56x16xbf16>, vector<16x128xbf16>, vector<56x128xf32> -> vector<56x128xf32>
    %c0_14 = arith.constant 0 : index
    %c0_15 = arith.constant 0 : index
    %16 = vector.load %arg9[%c0_14, %c0_15] : memref<32x128xf32, #tpu.memory_space<vmem>>, vector<32x128xf32>
    %17 = vector.extract_strided_slice %15 {offsets = [0, 0], sizes = [32, 128], strides = [1, 1]} : vector<56x128xf32> to vector<32x128xf32>
    %18 = arith.addf %16, %17 : vector<32x128xf32>
    %c0_16 = arith.constant 0 : index
    %c0_17 = arith.constant 0 : index
    %19 = vector.load %arg9[%c0_16, %c0_17] : memref<32x128xf32, #tpu.memory_space<vmem>>, vector<32x128xf32>
    tpu.vector_store %arg9[%c0_16, %c0_17], %18 {strides = array<i32>} : memref<32x128xf32, #tpu.memory_space<vmem>>, vector<32x128xf32>,
    %c1 = arith.constant 1 : index
    %c0_18 = arith.constant 0 : index
    %c0_19 = arith.constant 0 : index
    %20 = vector.load %arg3[%c1, %c0_18, %c0_19] : memref<9x16x128xbf16, #tpu.memory_space<vmem>>, vector<1x16x128xbf16>
    %21 = vector.shape_cast %20 : vector<1x16x128xbf16> to vector<16x128xbf16>
    %cst_20 = arith.constant dense<0.000000e+00> : vector<56x128xf32>
    %22 = tpu.matmul %12, %21, %cst_20 {dimension_numbers = #tpu.dot_dimension_numbers<[1], [0], [0], [1], [0, 0, 1, 1], [], []>} : vector<56x16xbf16>, vector<16x128xbf16>, vector<56x128xf32> -> vector<56x128xf32>
    %c0_21 = arith.constant 0 : index
    %c0_22 = arith.constant 0 : index
    %23 = vector.load %arg9[%c0_21, %c0_22] : memref<32x128xf32, #tpu.memory_space<vmem>>, vector<32x128xf32>
    %24 = vector.extract_strided_slice %22 {offsets = [1, 0], sizes = [32, 128], strides = [1, 1]} : vector<56x128xf32> to vector<32x128xf32>
    %25 = arith.addf %23, %24 : vector<32x128xf32>
    %c0_23 = arith.constant 0 : index
    %c0_24 = arith.constant 0 : index
    %26 = vector.load %arg9[%c0_23, %c0_24] : memref<32x128xf32, #tpu.memory_space<vmem>>, vector<32x128xf32>
    tpu.vector_store %arg9[%c0_23, %c0_24], %25 {strides = array<i32>} : memref<32x128xf32, #tpu.memory_space<vmem>>, vector<32x128xf32>,
    %c2 = arith.constant 2 : index
    %c0_25 = arith.constant 0 : index
    %c0_26 = arith.constant 0 : index
    %27 = vector.load %arg3[%c2, %c0_25, %c0_26] : memref<9x16x128xbf16, #tpu.memory_space<vmem>>, vector<1x16x128xbf16>
    %28 = vector.shape_cast %27 : vector<1x16x128xbf16> to vector<16x128xbf16>
    %cst_27 = arith.constant dense<0.000000e+00> : vector<56x128xf32>
    %29 = tpu.matmul %12, %28, %cst_27 {dimension_numbers = #tpu.dot_dimension_numbers<[1], [0], [0], [1], [0, 0, 1, 1], [], []>} : vector<56x16xbf16>, vector<16x128xbf16>, vector<56x128xf32> -> vector<56x128xf32>
    %c0_28 = arith.constant 0 : index
    %c0_29 = arith.constant 0 : index
    %30 = vector.load %arg9[%c0_28, %c0_29] : memref<32x128xf32, #tpu.memory_space<vmem>>, vector<32x128xf32>
    %31 = vector.extract_strided_slice %29 {offsets = [2, 0], sizes = [32, 128], strides = [1, 1]} : vector<56x128xf32> to vector<32x128xf32>
    %32 = arith.addf %30, %31 : vector<32x128xf32>
    %c0_30 = arith.constant 0 : index
    %c0_31 = arith.constant 0 : index
    %33 = vector.load %arg9[%c0_30, %c0_31] : memref<32x128xf32, #tpu.memory_space<vmem>>, vector<32x128xf32>
    tpu.vector_store %arg9[%c0_30, %c0_31], %32 {strides = array<i32>} : memref<32x128xf32, #tpu.memory_space<vmem>>, vector<32x128xf32>,
    %c3 = arith.constant 3 : index
    %c0_32 = arith.constant 0 : index
    %c0_33 = arith.constant 0 : index
    %34 = vector.load %arg3[%c3, %c0_32, %c0_33] : memref<9x16x128xbf16, #tpu.memory_space<vmem>>, vector<1x16x128xbf16>
    %35 = vector.shape_cast %34 : vector<1x16x128xbf16> to vector<16x128xbf16>
    %cst_34 = arith.constant dense<0.000000e+00> : vector<56x128xf32>
    %36 = tpu.matmul %12, %35, %cst_34 {dimension_numbers = #tpu.dot_dimension_numbers<[1], [0], [0], [1], [0, 0, 1, 1], [], []>} : vector<56x16xbf16>, vector<16x128xbf16>, vector<56x128xf32> -> vector<56x128xf32>
    %c0_35 = arith.constant 0 : index
    %c0_36 = arith.constant 0 : index
    %37 = vector.load %arg9[%c0_35, %c0_36] : memref<32x128xf32, #tpu.memory_space<vmem>>, vector<32x128xf32>
    %38 = vector.extract_strided_slice %36 {offsets = [10, 0], sizes = [32, 128], strides = [1, 1]} : vector<56x128xf32> to vector<32x128xf32>
    %39 = arith.addf %37, %38 : vector<32x128xf32>
    %c0_37 = arith.constant 0 : index
    %c0_38 = arith.constant 0 : index
    %40 = vector.load %arg9[%c0_37, %c0_38] : memref<32x128xf32, #tpu.memory_space<vmem>>, vector<32x128xf32>
    tpu.vector_store %arg9[%c0_37, %c0_38], %39 {strides = array<i32>} : memref<32x128xf32, #tpu.memory_space<vmem>>, vector<32x128xf32>,
    %c4 = arith.constant 4 : index
    %c0_39 = arith.constant 0 : index
    %c0_40 = arith.constant 0 : index
    %41 = vector.load %arg3[%c4, %c0_39, %c0_40] : memref<9x16x128xbf16, #tpu.memory_space<vmem>>, vector<1x16x128xbf16>
    %42 = vector.shape_cast %41 : vector<1x16x128xbf16> to vector<16x128xbf16>
    %cst_41 = arith.constant dense<0.000000e+00> : vector<56x128xf32>
    %43 = tpu.matmul %12, %42, %cst_41 {dimension_numbers = #tpu.dot_dimension_numbers<[1], [0], [0], [1], [0, 0, 1, 1], [], []>} : vector<56x16xbf16>, vector<16x128xbf16>, vector<56x128xf32> -> vector<56x128xf32>
    %c0_42 = arith.constant 0 : index
    %c0_43 = arith.constant 0 : index
    %44 = vector.load %arg9[%c0_42, %c0_43] : memref<32x128xf32, #tpu.memory_space<vmem>>, vector<32x128xf32>
    %45 = vector.extract_strided_slice %43 {offsets = [11, 0], sizes = [32, 128], strides = [1, 1]} : vector<56x128xf32> to vector<32x128xf32>
    %46 = arith.addf %44, %45 : vector<32x128xf32>
    %c0_44 = arith.constant 0 : index
    %c0_45 = arith.constant 0 : index
    %47 = vector.load %arg9[%c0_44, %c0_45] : memref<32x128xf32, #tpu.memory_space<vmem>>, vector<32x128xf32>
    tpu.vector_store %arg9[%c0_44, %c0_45], %46 {strides = array<i32>} : memref<32x128xf32, #tpu.memory_space<vmem>>, vector<32x128xf32>,
    %c5 = arith.constant 5 : index
    %c0_46 = arith.constant 0 : index
    %c0_47 = arith.constant 0 : index
    %48 = vector.load %arg3[%c5, %c0_46, %c0_47] : memref<9x16x128xbf16, #tpu.memory_space<vmem>>, vector<1x16x128xbf16>
    %49 = vector.shape_cast %48 : vector<1x16x128xbf16> to vector<16x128xbf16>
    %cst_48 = arith.constant dense<0.000000e+00> : vector<56x128xf32>
    %50 = tpu.matmul %12, %49, %cst_48 {dimension_numbers = #tpu.dot_dimension_numbers<[1], [0], [0], [1], [0, 0, 1, 1], [], []>} : vector<56x16xbf16>, vector<16x128xbf16>, vector<56x128xf32> -> vector<56x128xf32>
    %c0_49 = arith.constant 0 : index
    %c0_50 = arith.constant 0 : index
    %51 = vector.load %arg9[%c0_49, %c0_50] : memref<32x128xf32, #tpu.memory_space<vmem>>, vector<32x128xf32>
    %52 = vector.extract_strided_slice %50 {offsets = [12, 0], sizes = [32, 128], strides = [1, 1]} : vector<56x128xf32> to vector<32x128xf32>
    %53 = arith.addf %51, %52 : vector<32x128xf32>
    %c0_51 = arith.constant 0 : index
    %c0_52 = arith.constant 0 : index
    %54 = vector.load %arg9[%c0_51, %c0_52] : memref<32x128xf32, #tpu.memory_space<vmem>>, vector<32x128xf32>
    tpu.vector_store %arg9[%c0_51, %c0_52], %53 {strides = array<i32>} : memref<32x128xf32, #tpu.memory_space<vmem>>, vector<32x128xf32>,
    %c6 = arith.constant 6 : index
    %c0_53 = arith.constant 0 : index
    %c0_54 = arith.constant 0 : index
    %55 = vector.load %arg3[%c6, %c0_53, %c0_54] : memref<9x16x128xbf16, #tpu.memory_space<vmem>>, vector<1x16x128xbf16>
    %56 = vector.shape_cast %55 : vector<1x16x128xbf16> to vector<16x128xbf16>
    %cst_55 = arith.constant dense<0.000000e+00> : vector<56x128xf32>
    %57 = tpu.matmul %12, %56, %cst_55 {dimension_numbers = #tpu.dot_dimension_numbers<[1], [0], [0], [1], [0, 0, 1, 1], [], []>} : vector<56x16xbf16>, vector<16x128xbf16>, vector<56x128xf32> -> vector<56x128xf32>
    %c0_56 = arith.constant 0 : index
    %c0_57 = arith.constant 0 : index
    %58 = vector.load %arg9[%c0_56, %c0_57] : memref<32x128xf32, #tpu.memory_space<vmem>>, vector<32x128xf32>
    %59 = vector.extract_strided_slice %57 {offsets = [20, 0], sizes = [32, 128], strides = [1, 1]} : vector<56x128xf32> to vector<32x128xf32>
    %60 = arith.addf %58, %59 : vector<32x128xf32>
    %c0_58 = arith.constant 0 : index
    %c0_59 = arith.constant 0 : index
    %61 = vector.load %arg9[%c0_58, %c0_59] : memref<32x128xf32, #tpu.memory_space<vmem>>, vector<32x128xf32>
    tpu.vector_store %arg9[%c0_58, %c0_59], %60 {strides = array<i32>} : memref<32x128xf32, #tpu.memory_space<vmem>>, vector<32x128xf32>,
    %c7 = arith.constant 7 : index
    %c0_60 = arith.constant 0 : index
    %c0_61 = arith.constant 0 : index
    %62 = vector.load %arg3[%c7, %c0_60, %c0_61] : memref<9x16x128xbf16, #tpu.memory_space<vmem>>, vector<1x16x128xbf16>
    %63 = vector.shape_cast %62 : vector<1x16x128xbf16> to vector<16x128xbf16>
    %cst_62 = arith.constant dense<0.000000e+00> : vector<56x128xf32>
    %64 = tpu.matmul %12, %63, %cst_62 {dimension_numbers = #tpu.dot_dimension_numbers<[1], [0], [0], [1], [0, 0, 1, 1], [], []>} : vector<56x16xbf16>, vector<16x128xbf16>, vector<56x128xf32> -> vector<56x128xf32>
    %c0_63 = arith.constant 0 : index
    %c0_64 = arith.constant 0 : index
    %65 = vector.load %arg9[%c0_63, %c0_64] : memref<32x128xf32, #tpu.memory_space<vmem>>, vector<32x128xf32>
    %66 = vector.extract_strided_slice %64 {offsets = [21, 0], sizes = [32, 128], strides = [1, 1]} : vector<56x128xf32> to vector<32x128xf32>
    %67 = arith.addf %65, %66 : vector<32x128xf32>
    %c0_65 = arith.constant 0 : index
    %c0_66 = arith.constant 0 : index
    %68 = vector.load %arg9[%c0_65, %c0_66] : memref<32x128xf32, #tpu.memory_space<vmem>>, vector<32x128xf32>
    tpu.vector_store %arg9[%c0_65, %c0_66], %67 {strides = array<i32>} : memref<32x128xf32, #tpu.memory_space<vmem>>, vector<32x128xf32>,
    %c8 = arith.constant 8 : index
    %c0_67 = arith.constant 0 : index
    %c0_68 = arith.constant 0 : index
    %69 = vector.load %arg3[%c8, %c0_67, %c0_68] : memref<9x16x128xbf16, #tpu.memory_space<vmem>>, vector<1x16x128xbf16>
    %70 = vector.shape_cast %69 : vector<1x16x128xbf16> to vector<16x128xbf16>
    %cst_69 = arith.constant dense<0.000000e+00> : vector<56x128xf32>
    %71 = tpu.matmul %12, %70, %cst_69 {dimension_numbers = #tpu.dot_dimension_numbers<[1], [0], [0], [1], [0, 0, 1, 1], [], []>} : vector<56x16xbf16>, vector<16x128xbf16>, vector<56x128xf32> -> vector<56x128xf32>
    %c0_70 = arith.constant 0 : index
    %c0_71 = arith.constant 0 : index
    %72 = vector.load %arg9[%c0_70, %c0_71] : memref<32x128xf32, #tpu.memory_space<vmem>>, vector<32x128xf32>
    %73 = vector.extract_strided_slice %71 {offsets = [22, 0], sizes = [32, 128], strides = [1, 1]} : vector<56x128xf32> to vector<32x128xf32>
    %74 = arith.addf %72, %73 : vector<32x128xf32>
    %c0_72 = arith.constant 0 : index
    %c0_73 = arith.constant 0 : index
    %75 = vector.load %arg9[%c0_72, %c0_73] : memref<32x128xf32, #tpu.memory_space<vmem>>, vector<32x128xf32>
    tpu.vector_store %arg9[%c0_72, %c0_73], %74 {strides = array<i32>} : memref<32x128xf32, #tpu.memory_space<vmem>>, vector<32x128xf32>,
    %c0_74 = arith.constant 0 : index
    %c0_75 = arith.constant 0 : index
    %76 = vector.load %arg9[%c0_74, %c0_75] : memref<32x128xf32, #tpu.memory_space<vmem>>, vector<32x128xf32>
    %c0_76 = arith.constant 0 : index
    %c0_77 = arith.constant 0 : index
    %77 = vector.load %arg5[%c0_76, %c0_77] : memref<1x128xf32, #tpu.memory_space<vmem>>, vector<1x128xf32>
    %78 = vector.broadcast %77 : vector<1x128xf32> to vector<32x128xf32>
    %79 = arith.addf %76, %78 : vector<32x128xf32>
    %cst_78 = arith.constant 0.000000e+00 : f32
    %80 = vector.broadcast %cst_78 : f32 to vector<32x128xf32>
    %81 = arith.maximumf %79, %80 : vector<32x128xf32>
    %82 = arith.truncf %81 : vector<32x128xf32> to vector<32x128xbf16>
    %c0_79 = arith.constant 0 : index
    %c0_80 = arith.constant 0 : index
    %83 = vector.load %arg6[%c0_79, %c0_80] : memref<32x128xbf16, #tpu.memory_space<vmem>>, vector<32x128xbf16>
    tpu.vector_store %arg6[%c0_79, %c0_80], %82 {strides = array<i32>} : memref<32x128xbf16, #tpu.memory_space<vmem>>, vector<32x128xbf16>,
    return
  }
  func.func @transform_1(%arg0: i32) -> (i32, i32) {
    %c0_i32 = arith.constant 0 : i32
    %c0_i32_0 = arith.constant 0 : i32
    return %arg0, %c0_i32 : i32, i32
  }
  func.func @transform_2(%arg0: i32) -> (i32, i32, i32) {
    %c0_i32 = arith.constant 0 : i32
    %c0_i32_0 = arith.constant 0 : i32
    %c0_i32_1 = arith.constant 0 : i32
    %c0_i32_2 = arith.constant 0 : i32
    return %c0_i32, %c0_i32_0, %c0_i32_1 : i32, i32, i32
  }
  func.func @transform_3(%arg0: i32) -> (i32, i32) {
    %c0_i32 = arith.constant 0 : i32
    %c0_i32_0 = arith.constant 0 : i32
    %c0_i32_1 = arith.constant 0 : i32
    return %c0_i32, %c0_i32_0 : i32, i32
  }
  func.func @transform_4(%arg0: i32) -> (i32, i32) {
    %c0_i32 = arith.constant 0 : i32
    %c0_i32_0 = arith.constant 0 : i32
    %c0_i32_1 = arith.constant 0 : i32
    return %c0_i32, %c0_i32_0 : i32, i32
  }
  func.func @transform_5(%arg0: i32) -> (i32, i32) {
    %c0_i32 = arith.constant 0 : i32
    %c0_i32_0 = arith.constant 0 : i32
    return %arg0, %c0_i32 : i32, i32
  }
}

</mosaic_0001>

<bundles_post_ra>
// kernel: basic_block_forward.2
= control target key start
LH: loop header
LB: loop body
LE: loop exit
PB: predicated region body
PF: predicated region fallthrough
CT: control target
= control target key end

     0   :  { %s410_s12 = smov 0   ;;  %s439_s0 = inlined_call_operand.vmem [shape: bf16[128,48], index: 0, kind: input, shape index: {}]   ;;  %s440_s1 = inlined_call_operand.vmem [shape: bf16[48,128], index: 1, kind: input, shape index: {}]   ;;  %s441_s2 = inlined_call_operand.vmem [shape: f32[1,128], index: 2, kind: input, shape index: {}]   ;;  %s442_s3 = inlined_call_operand.vmem [shape: bf16[128,128], index: 3, kind: output, shape index: {}]  }
   0x1 LB: > { %s326_s13 = sadd.s32 4294967295, %s386_s12   ;;  %p330_p0 = scmp.ge.s32.totalorder %s386_s12, 1  ;;  %s386_s12 = sphi %s410_s12, %s13_s12  }
   0x2   : > { %p138_p1 = scmp.lt.s32.totalorder %s386_s12, 9 }
   0x4   : > { %p139_p2 = pnand %p330_p0, %p138_p1 }
   0x5   : > { %v376_v0 = vld [vmem:[%s440_s1] sm:$0xff] (!%p139_p2)   ;;  %v388_v1 = vmov (!%p139_p2), 0.0   ;;  %v377_v2 = vld [vmem:[%s440_s1 + $0x8] sm:$0xff] (!%p139_p2)   ;;  %vm389_vm0 = vmmov (!%p139_p2), 0   ;;  %s331_s18 = sshll.u32 (!%p139_p2), %s326_s13, 1  ;;  %v378_v3 = vld [vmem:[%s440_s1 + $0x10] sm:$0xff] (!%p139_p2)  }
   0x6   : > { %142 = sbr.rel (%p139_p2) target bundleno = 239 (0xef), region = 32  ;;  %356 = vmatprep.subr.bf16.mxu0 (!%p139_p2), %v388_v1  ;;  %362 = vmatprep.mubr.msk.bf16.mxu0 (!%p139_p2), %vm389_vm0, %v388_v1  ;;  %p163_p3 = scmp.lt.s32.totalorder (!%p139_p2), %s331_s18, 15  ;;  %vm213_vm1 = vcmask (!%p139_p2), 392192   ;;  %v335_v5 = vld [vmem:[%s441_s2] ss:$0 sm:$0xff] (!%p139_p2) }
   0x7   : > { %357 = vmatpush3.bf16.msra.mxu0 (!%p139_p2), %v376_v0 }
   0x8   : > { %358 = vmatprep.subr.bf16.mxu0 (!%p139_p2), %v388_v1 }
   0xb   : > { %359 = vmatpush3.bf16.msra.mxu0 (!%p139_p2), %v377_v2 }
   0xc   : > { %360 = vmatprep.subr.bf16.mxu0 (!%p139_p2), %v388_v1 }
   0xd   : > { %s444_s18 = smov (!%p163_p3, %s331_s18), 15 }
   0xe   : > { %s332_s21 = sshll.u32 %s444_s18, 2 }
   0xf   : > { %s166_s24 = scalar_lea.vmem %s439_s0, %s332_s21  ;;  %361 = vmatpush3.bf16.msra.mxu0 %v378_v3  ;;  %s172_s29 = scalar_lea.vmem %s442_s3, %s332_s21 }
  0x10   : > { %v379_v4 = vld [vmem:[%s166_s24] sm:$0xff]  }
  0x12   : > { %363 = vmatmul.mubr.msk.bf16.vlgmr.msra.gmra.mrb[0].mxu0 %vm213_vm1, %v379_v4 }
  0xe5   : > { %v251_v6 = vpop.f32.mrb[0].mxu0 }
  0xe6   : > { %v252_v7 = vadd.f32 %v335_v5, %v251_v6  ;;  %v364_v8 = vpop.f32.mrb[1].mxu0 }
  0xe7   : > { %v254_v9 = vpop.f32.mrb[2].mxu0 }
  0xe8   : > { %v255_v10 = vadd.f32 %v335_v5, %v254_v9  ;;  %v365_v11 = vpop.f32.mrb[3].mxu0  ;;  %v258_v12 = vmax.f32 %v252_v7, 0.0 }
  0xea   : > { %v259_v13 = vmax.f32 %v255_v10, 0.0 }
  0xec   : > { %v350_v14 = vpack.c.bf16 %v259_v13, %v258_v12 }
  0xee   : > { %351 = vst [vmem:[%s172_s29] sm:$0xff] %v350_v14  }
  0xef PF: > { %s13_s12 = sadd.s32 1, %s386_s12  }
  0xf0   : > { %p10_p4 = scmp.ge.s32.totalorder %s13_s12, 10  }
  0xf2   :  { %12 = sbr.rel (!%p10_p4) target bundleno = 1 (0x1), region = 62 }

// kernel: basic_block_forward.3
= control target key start
LH: loop header
LB: loop body
LE: loop exit
PB: predicated region body
PF: predicated region fallthrough
CT: control target
= control target key end

     0   :  { %s1718_s18 = smov 0   ;;  %s1845_s0 = inlined_call_operand.vmem [shape: bf16[248,16], index: 0, kind: input, shape index: {}]   ;;  %s1846_s1 = inlined_call_operand.vmem [shape: bf16[224,16], index: 1, kind: input, shape index: {}]   ;;  %s1847_s2 = inlined_call_operand.vmem [shape: bf16[9,16,128], index: 2, kind: input, shape index: {}]   ;;  %s1848_s3 = inlined_call_operand.vmem [shape: bf16[16,128], index: 3, kind: input, shape index: {}]   ;;  %s1849_s4 = inlined_call_operand.vmem [shape: f32[1,128], index: 4, kind: input, shape index: {}]   ;;  %s1850_s5 = inlined_call_operand.vmem [shape: bf16[224,128], index: 5, kind: output, shape index: {}]  }
   0x1 LB: > { %s1401_s19 = sadd.s32 4294967295, %s1686_s18   ;;  %p1405_p0 = scmp.ge.s32.totalorder %s1686_s18, 1  ;;  %s1686_s18 = sphi %s1718_s18, %s15_s18  }
   0x2   : > { %p164_p1 = scmp.lt.s32.totalorder %s1686_s18, 8 }
   0x4   : > { %p165_p2 = pnand %p1405_p0, %p164_p1 }
   0x5   : > { %s1406_s20 = sshll.u32 (!%p165_p2), %s1401_s19, 2  ;;  %s1410_s21 = sshll.u32 (!%p165_p2), %s1401_s19, 5 }
   0x6   : > { %168 = sbr.rel (%p165_p2) target bundleno = 327 (0x147), region = 36  ;;  %p191_p3 = scmp.lt.s32.totalorder (!%p165_p2), %s1406_s20, 27 }
   0x7   : > { %s204_s22 = sshra.s32 (!%p165_p2), %s1410_s21, 3 }
   0x8   : > { %s1411_s23 = sshll.u32 (!%p165_p2), %s204_s22, 2 }
   0x9   : > { %s207_s26 = scalar_lea.vmem (!%p165_p2), %s1845_s0, %s1411_s23 }
   0xa   : > { %v245_v0 = vld [vmem:[%s207_s26] sm:$0xff] (!%p165_p2)  ;;  %v247_v1 = vld [vmem:[%s207_s26 + $0x8] sm:$0xff] (!%p165_p2)  ;;  %v249_v2 = vld [vmem:[%s207_s26 + $0x10] sm:$0xff] (!%p165_p2) }
   0xb   : > { %246 = vst [vmem:[#allocation2] sm:$0xff] (!%p165_p2), %v245_v0  ;;  %248 = vst [vmem:[#allocation2 + $0x8] sm:$0xff] (!%p165_p2), %v247_v1  ;;  %v1412_v3 = vld [vmem:[%s207_s26 + $0x18] sm:$0xf] (!%p165_p2) }
   0xc   : > { %250 = vst [vmem:[#allocation2 + $0x10] sm:$0xff] (!%p165_p2), %v249_v2  ;;  %261 = vst [vmem:[#allocation2 + $0x18] sm:$0xf] (!%p165_p2), %v1412_v3 }
   0xd   : > { %s1852_s20 = smov (!%p191_p3, %s1406_s20), 27 }
   0xe   : > { %s1407_s27 = sshll.u32 %s1852_s20, 2 }
   0xf   : > { %s194_s30 = scalar_lea.vmem %s1846_s1, %s1407_s27  ;;  %s1735_s8 = scalar_lea.vmem %s1850_s5, %s1407_s27 }
  0x10   : > { %265 = vsyncadd [#allocation3], 448  ;;  %v1662_v4 = vld [vmem:[%s1848_s3] sm:$0xff]   ;;  %vm288_vm0 = vcmask 130048   ;;  %v1664_v6 = vld [vmem:[%s194_s30 + $0x8] sm:$0xff]  }
  0x11   : > { %v1663_v5 = vld [vmem:[%s194_s30] sm:$0xff]   ;;  %1554 = vmatprep.subr.bf16.mxu0 %v1662_v4 }
  0x12   : > { %1555 = vmatpush3.bf16.msra.mxu0 %v1662_v4  ;;  %1556 = vmatprep.mubr.msk.bf16.mxu0 %vm288_vm0, %v1663_v5 }
  0x15   : > { %1557 = vmatmul.mubr.msk.bf16.vlgmr.msra.gmra.mrb[0].mxu0 %vm288_vm0, %v1664_v6 }
  0x16   : > { %1682 = dma.done.wait [#allocation3], 448 }
  0x17   : > { %1683 = vsyncadd [#allocation3], 4294966848  ;;  %v1665_v7 = vld [vmem:[%s1847_s2] sm:$0xff]   ;;  %v1666_v8 = vld [vmem:[%s1847_s2 + $0x8] sm:$0xff]   ;;  %vm550_vm1 = vcmask 1046528   ;;  %vm652_vm2 = vcmask 1045504  }
  0x18   : > { %1560 = vmatprep.subr.bf16.mxu0 %v1665_v7  ;;  %v1667_v9 = vld [vmem:[#allocation2] sm:$0xff]   ;;  %1570 = vmatprep.subr.bf16.mxu1 %v1666_v8  ;;  %v1668_v10 = vld [vmem:[#allocation2 + $0x8] sm:$0xff]   ;;  %v1669_v11 = vld [vmem:[%s1847_s2 + $0x10] sm:$0xff]   ;;  %vm957_vm3 = vcmask 1043456   ;;  %vm855_vm4 = vcmask 1044480   ;;  %vm1160_vm5 = vcmask 1042432  }
  0x19   : > { %1561 = vmatpush3.bf16.msra.mxu0 %v1665_v7  ;;  %1571 = vmatpush3.bf16.msra.mxu1 %v1666_v8  ;;  %v1670_v12 = vld [vmem:[#allocation2 + $0x10] sm:$0xff]   ;;  %v1672_v13 = vld [vmem:[%s1847_s2 + $0x18] sm:$0xff]   ;;  %v1673_v14 = vld [vmem:[%s1847_s2 + $0x20] sm:$0xff]   ;;  %vm1262_vm6 = vcmask 1041408  }
  0x1a   : > { %1562 = vmatprep.mubr.msk.bf16.mxu0 %vm288_vm0, %v1667_v9  ;;  %1572 = vmatprep.mubr.msk.bf16.mxu1 %vm288_vm0, %v1667_v9  ;;  %v1674_v15 = vld [vmem:[%s1847_s2 + $0x28] sm:$0xff]   ;;  %v1671_v16 = vld [vmem:[#allocation2 + $0x18] ss:$0 sps:$4 sm:$0xff]   ;;  %v1675_v17 = vld [vmem:[%s1847_s2 + $0x30] sm:$0xff]  }
  0x1b   : > { %1580 = vmatprep.subr.bf16.mxu1 %v1669_v11  ;;  %1590 = vmatprep.subr.bf16.mxu0 %v1672_v13  ;;  %v1676_v18 = vld [vmem:[%s1847_s2 + $0x38] sm:$0xff]   ;;  %v1677_v19 = vld [vmem:[%s1847_s2 + $0x40] sm:$0xff]  }
  0x1c   : > { %1573 = vmatmul.mubr.msk.bf16.vlgmr.msra.gmra.mrb[0].mxu1 %vm288_vm0, %v1668_v10 }
  0x1d   : > { %1581 = vmatpush3.bf16.msra.mxu1 %v1669_v11  ;;  %1576 = vmatprep.mubr.msk.bf16.mxu1 %vm288_vm0, %v1670_v12 }
  0x1e   : > { %1600 = vmatprep.subr.bf16.mxu1 %v1673_v14 }
  0x21   : > { %1563 = vmatmul.mubr.msk.bf16.vlgmr.msra.gmra.mrb[0].mxu0 %vm288_vm0, %v1668_v10 }
  0x22   : > { %1566 = vmatprep.mubr.msk.bf16.mxu0 %vm288_vm0, %v1670_v12  ;;  %1591 = vmatpush3.bf16.msra.mxu0 %v1672_v13 }
  0x23   : > { %1610 = vmatprep.subr.bf16.mxu0 %v1674_v15 }
  0x24   : > { %1577 = vmatmul.mubr.msk.bf16.gmra.mrb[4].mxu1 %vm288_vm0, %v1671_v16 }
  0x25   : > { %1582 = vmatprep.mubr.msk.bf16.mxu1 %vm288_vm0, %v1667_v9 }
  0x29   : > { %1567 = vmatmul.mubr.msk.bf16.gmra.mrb[4].mxu0 %vm288_vm0, %v1671_v16 }
  0x2a   : > { %1592 = vmatprep.mubr.msk.bf16.mxu0 %vm288_vm0, %v1667_v9 }
  0x2c   : > { %1583 = vmatmul.mubr.msk.bf16.vlgmr.msra.gmra.mrb[8].mxu1 %vm288_vm0, %v1668_v10 }
  0x2d   : > { %1601 = vmatpush3.bf16.msra.mxu1 %v1673_v14  ;;  %1586 = vmatprep.mubr.msk.bf16.mxu1 %vm288_vm0, %v1670_v12 }
  0x2e   : > { %1620 = vmatprep.subr.bf16.mxu1 %v1675_v17 }
  0x31   : > { %1593 = vmatmul.mubr.msk.bf16.vlgmr.msra.gmra.mrb[8].mxu0 %vm288_vm0, %v1668_v10 }
  0x32   : > { %1596 = vmatprep.mubr.msk.bf16.mxu0 %vm288_vm0, %v1670_v12  ;;  %1611 = vmatpush3.bf16.msra.mxu0 %v1674_v15 }
  0x33   : > { %1630 = vmatprep.subr.bf16.mxu0 %v1676_v18 }
  0x34   : > { %1587 = vmatmul.mubr.msk.bf16.gmra.mrb[12].mxu1 %vm288_vm0, %v1671_v16 }
  0x35   : > { %1602 = vmatprep.mubr.msk.bf16.mxu1 %vm288_vm0, %v1667_v9 }
  0x39   : > { %1597 = vmatmul.mubr.msk.bf16.gmra.mrb[12].mxu0 %vm288_vm0, %v1671_v16 }
  0x3a   : > { %1612 = vmatprep.mubr.msk.bf16.mxu0 %vm288_vm0, %v1667_v9 }
  0x3c   : > { %1603 = vmatmul.mubr.msk.bf16.vlgmr.msra.gmra.mrb[16].mxu1 %vm288_vm0, %v1668_v10 }
  0x3d   : > { %1621 = vmatpush3.bf16.msra.mxu1 %v1675_v17  ;;  %1606 = vmatprep.mubr.msk.bf16.mxu1 %vm288_vm0, %v1670_v12 }
  0x3e   : > { %1640 = vmatprep.subr.bf16.mxu1 %v1677_v19 }
  0x41   : > { %1613 = vmatmul.mubr.msk.bf16.vlgmr.msra.gmra.mrb[16].mxu0 %vm288_vm0, %v1668_v10 }
  0x42   : > { %1616 = vmatprep.mubr.msk.bf16.mxu0 %vm288_vm0, %v1670_v12  ;;  %1631 = vmatpush3.bf16.msra.mxu0 %v1676_v18 }
  0x44   : > { %1607 = vmatmul.mubr.msk.bf16.gmra.mrb[20].mxu1 %vm288_vm0, %v1671_v16 }
  0x45   : > { %1622 = vmatprep.mubr.msk.bf16.mxu1 %vm288_vm0, %v1667_v9 }
  0x49   : > { %1617 = vmatmul.mubr.msk.bf16.gmra.mrb[20].mxu0 %vm288_vm0, %v1671_v16 }
  0x4a   : > { %1632 = vmatprep.mubr.msk.bf16.mxu0 %vm288_vm0, %v1667_v9 }
  0x4c   : > { %1623 = vmatmul.mubr.msk.bf16.vlgmr.msra.gmra.mrb[24].mxu1 %vm288_vm0, %v1668_v10 }
  0x4d   : > { %1641 = vmatpush3.bf16.msra.mxu1 %v1677_v19  ;;  %1626 = vmatprep.mubr.msk.bf16.mxu1 %vm288_vm0, %v1670_v12 }
  0x51   : > { %1633 = vmatmul.mubr.msk.bf16.vlgmr.msra.gmra.mrb[24].mxu0 %vm288_vm0, %v1668_v10 }
  0x52   : > { %1636 = vmatprep.mubr.msk.bf16.mxu0 %vm288_vm0, %v1670_v12 }
  0x54   : > { %1627 = vmatmul.mubr.msk.bf16.gmra.mrb[28].mxu1 %vm288_vm0, %v1671_v16 }
  0x55   : > { %1642 = vmatprep.mubr.msk.bf16.mxu1 %vm288_vm0, %v1667_v9 }
  0x59   : > { %1637 = vmatmul.mubr.msk.bf16.gmra.mrb[28].mxu0 %vm288_vm0, %v1671_v16 }
  0x5c   : > { %1643 = vmatmul.mubr.msk.bf16.vlgmr.msra.gmra.mrb[32].mxu1 %vm288_vm0, %v1668_v10 }
  0x5d   : > { %1646 = vmatprep.mubr.msk.bf16.mxu1 %vm288_vm0, %v1670_v12 }
  0x64   : > { %1647 = vmatmul.mubr.msk.bf16.gmra.mrb[36].mxu1 %vm288_vm0, %v1671_v16 }
  0xef   : > { %v1574_v21 = vpop.f32.mrb[0].mxu1 }
  0xf0   : > { %v513_v23 = vpop.f32.mrb[1].mxu1  ;;  %v554_v27 = vrot.slane %v1574_v21, 1 }
  0xf1   : > { %v1575_v25 = vpop.f32.mrb[2].mxu1  ;;  %v551_v30 = vrot.slane %v513_v23, 1 }
  0xf2   : > { %v556_v28 = vrot.slane %v1575_v25, 1  ;;  %v516_v29 = vpop.f32.mrb[3].mxu1 }
  0xf3   : > { %v552_v31 = vrot.slane %v516_v29, 1 }
  0xf4   : > { %v1564_v20 = vpop.f32.mrb[0].mxu0  ;;  %v557_v32 = vsel %vm550_vm1, %v554_v27, %v556_v28 }
  0xf5   : > { %v431_v22 = vpop.f32.mrb[1].mxu0  ;;  %v566_v33 = vadd.f32 %v1564_v20, %v557_v32  ;;  %v553_v34 = vsel %vm550_vm1, %v551_v30, %v552_v31  ;;  %v555_v35 = vsel %vm550_vm1, %v552_v31, %v554_v27 }
  0xf6   : > { %v1565_v24 = vpop.f32.mrb[2].mxu0  ;;  %v564_v36 = vadd.f32 %v553_v34, %v431_v22 }
  0xf7   : > { %v434_v26 = vpop.f32.mrb[3].mxu0  ;;  %v1578_v39 = vpop.f32.mrb[4].mxu1 }
  0xf8   : > { %v565_v37 = vadd.f32 %v555_v35, %v434_v26  ;;  %v529_v41 = vpop.f32.mrb[5].mxu1 }
  0xf9   : > { %v558_v43 = vrot.slane %v529_v41, 1  ;;  %v1579_v44 = vpop.f32.mrb[6].mxu1 }
  0xfa   : > { %v532_v46 = vpop.f32.mrb[7].mxu1 }
  0xfb   : > { %v559_v47 = vsel %vm550_vm1, %v556_v28, %v558_v43 }
  0xfc   : > { %v1568_v38 = vpop.f32.mrb[4].mxu0  ;;  %v567_v48 = vadd.f32 %v1565_v24, %v559_v47 }
  0xfd   : > { %v447_v40 = vpop.f32.mrb[5].mxu0 }
  0xfe   : > { %v1569_v42 = vpop.f32.mrb[6].mxu0 }
  0xff   : > { %v449_v45 = vpop.f32.mrb[7].mxu0  ;;  %v1584_v50 = vpop.f32.mrb[8].mxu1 }
 0x100   : > { %v615_v53 = vpop.f32.mrb[9].mxu1  ;;  %v656_v58 = vrot.slane %v1584_v50, 2 }
 0x101   : > { %v1585_v55 = vpop.f32.mrb[10].mxu1  ;;  %v653_v62 = vrot.slane %v615_v53, 2 }
 0x102   : > { %v658_v59 = vrot.slane %v1585_v55, 2  ;;  %v618_v60 = vpop.f32.mrb[11].mxu1 }
 0x103   : > { %v654_v63 = vrot.slane %v618_v60, 2 }
 0x104   : > { %v1594_v49 = vpop.f32.mrb[8].mxu0  ;;  %v659_v1 = vsel %vm652_vm2, %v656_v58, %v658_v59 }
 0x105   : > { %v755_v51 = vrot.slane %v1594_v49, 2  ;;  %v717_v52 = vpop.f32.mrb[9].mxu0  ;;  %v668_v3 = vadd.f32 %v659_v1, %v566_v33  ;;  %v655_v4 = vsel %vm652_vm2, %v653_v62, %v654_v63  ;;  %v657_v5 = vsel %vm652_vm2, %v654_v63, %v656_v58 }
 0x106   : > { %v1595_v54 = vpop.f32.mrb[10].mxu0  ;;  %v666_v6 = vadd.f32 %v655_v4, %v564_v36  ;;  %v667_v7 = vadd.f32 %v657_v5, %v565_v37 }
 0x107   : > { %v757_v56 = vrot.slane %v1595_v54, 2  ;;  %v719_v57 = vpop.f32.mrb[11].mxu0  ;;  %v1588_v9 = vpop.f32.mrb[12].mxu1 }
 0x108   : > { %v754_v61 = vrot.slane %v719_v57, 2  ;;  %v631_v13 = vpop.f32.mrb[13].mxu1 }
 0x109   : > { %v758_v0 = vsel %vm652_vm2, %v755_v51, %v757_v56  ;;  %v660_v16 = vrot.slane %v631_v13, 2  ;;  %v1589_v17 = vpop.f32.mrb[14].mxu1 }
 0x10a   : > { %v756_v2 = vsel %vm652_vm2, %v754_v61, %v755_v51  ;;  %v768_v11 = vadd.f32 %v758_v0, %v667_v7  ;;  %v634_v20 = vpop.f32.mrb[15].mxu1 }
 0x10b   : > { %v767_v12 = vadd.f32 %v756_v2, %v666_v6  ;;  %v661_v22 = vsel %vm652_vm2, %v658_v59, %v660_v16 }
 0x10c   : > { %v1598_v8 = vpop.f32.mrb[12].mxu0  ;;  %v669_v24 = vadd.f32 %v661_v22, %v567_v48 }
 0x10d   : > { %v732_v10 = vpop.f32.mrb[13].mxu0 }
 0x10e   : > { %v759_v14 = vrot.slane %v732_v10, 2  ;;  %v1599_v15 = vpop.f32.mrb[14].mxu0 }
 0x10f   : > { %v735_v18 = vpop.f32.mrb[15].mxu0  ;;  %v1604_v28 = vpop.f32.mrb[16].mxu1 }
 0x110   : > { %v760_v19 = vsel %vm652_vm2, %v757_v56, %v759_v14  ;;  %v761_v21 = vrot.slane %v735_v18, 2  ;;  %v818_v31 = vpop.f32.mrb[17].mxu1  ;;  %v857_v36 = vrot.slane %v1604_v28, 3 }
 0x111   : > { %v769_v23 = vadd.f32 %v760_v19, %v668_v3  ;;  %v1605_v33 = vpop.f32.mrb[18].mxu1 }
 0x112   : > { %v762_v25 = vsel %vm652_vm2, %v759_v14, %v761_v21  ;;  %v859_v37 = vrot.slane %v1605_v33, 3  ;;  %v820_v38 = vpop.f32.mrb[19].mxu1 }
 0x113   : > { %v770_v26 = vadd.f32 %v762_v25, %v669_v24  ;;  %v856_v40 = vrot.slane %v820_v38, 3 }
 0x114   : > { %v1614_v27 = vpop.f32.mrb[16].mxu0  ;;  %v860_v42 = vsel %vm855_vm4, %v857_v36, %v859_v37 }
 0x115   : > { %v959_v29 = vrot.slane %v1614_v27, 4  ;;  %v920_v30 = vpop.f32.mrb[17].mxu0  ;;  %v870_v44 = vadd.f32 %v860_v42, %v768_v11  ;;  %v858_v45 = vsel %vm855_vm4, %v856_v40, %v857_v36 }
 0x116   : > { %v1615_v32 = vpop.f32.mrb[18].mxu0  ;;  %v869_v46 = vadd.f32 %v858_v45, %v767_v12 }
 0x117   : > { %v961_v34 = vrot.slane %v1615_v32, 4  ;;  %v922_v35 = vpop.f32.mrb[19].mxu0  ;;  %v1608_v49 = vpop.f32.mrb[20].mxu1 }
 0x118   : > { %v958_v39 = vrot.slane %v922_v35, 4  ;;  %v833_v52 = vpop.f32.mrb[21].mxu1 }
 0x119   : > { %v962_v41 = vsel %vm957_vm3, %v959_v29, %v961_v34  ;;  %v861_v55 = vrot.slane %v833_v52, 3  ;;  %v1609_v56 = vpop.f32.mrb[22].mxu1 }
 0x11a   : > { %v960_v43 = vsel %vm957_vm3, %v958_v39, %v959_v29  ;;  %v972_v48 = vadd.f32 %v962_v41, %v870_v44  ;;  %v836_v58 = vpop.f32.mrb[23].mxu1 }
 0x11b   : > { %v971_v51 = vadd.f32 %v960_v43, %v869_v46  ;;  %v862_v61 = vsel %vm855_vm4, %v859_v37, %v861_v55  ;;  %v863_v62 = vrot.slane %v836_v58, 3 }
 0x11c   : > { %v1618_v47 = vpop.f32.mrb[20].mxu0  ;;  %v871_v63 = vadd.f32 %v862_v61, %v769_v23 }
 0x11d   : > { %v935_v50 = vpop.f32.mrb[21].mxu0  ;;  %v864_v1 = vsel %vm855_vm4, %v861_v55, %v863_v62 }
 0x11e   : > { %v963_v53 = vrot.slane %v935_v50, 4  ;;  %v1619_v54 = vpop.f32.mrb[22].mxu0  ;;  %v872_v2 = vadd.f32 %v864_v1, %v770_v26 }
 0x11f   : > { %v938_v57 = vpop.f32.mrb[23].mxu0  ;;  %v1624_v5 = vpop.f32.mrb[24].mxu1 }
 0x120   : > { %v964_v59 = vsel %vm957_vm3, %v961_v34, %v963_v53  ;;  %v965_v60 = vrot.slane %v938_v57, 4  ;;  %v1022_v9 = vpop.f32.mrb[25].mxu1  ;;  %v1059_v14 = vrot.slane %v1624_v5, 4  ;;  %v1483_v57 = vld [vmem:[%s1849_s4] ss:$0 sm:$0xff] }
 0x121   : > { %v973_v3 = vadd.f32 %v964_v59, %v871_v63  ;;  %v1625_v11 = vpop.f32.mrb[26].mxu1 }
 0x122   : > { %v966_v0 = vsel %vm957_vm3, %v963_v53, %v965_v60  ;;  %v1060_v15 = vrot.slane %v1625_v11, 4  ;;  %v1024_v16 = vpop.f32.mrb[27].mxu1 }
 0x123   : > { %v974_v8 = vadd.f32 %v966_v0, %v872_v2 }
 0x124   : > { %v1634_v4 = vpop.f32.mrb[24].mxu0  ;;  %v1061_v18 = vsel %vm957_vm3, %v1059_v14, %v1060_v15 }
 0x125   : > { %v1161_v6 = vrot.slane %v1634_v4, 5  ;;  %v1123_v7 = vpop.f32.mrb[25].mxu0  ;;  %v1072_v19 = vadd.f32 %v1061_v18, %v971_v51 }
 0x126   : > { %v1635_v10 = vpop.f32.mrb[26].mxu0 }
 0x127   : > { %v1162_v12 = vrot.slane %v1635_v10, 5  ;;  %v1125_v13 = vpop.f32.mrb[27].mxu0  ;;  %v1628_v22 = vpop.f32.mrb[28].mxu1 }
 0x128   : > { %v1036_v24 = vpop.f32.mrb[29].mxu1  ;;  %v1066_v34 = vrot.slane %v1628_v22, 4 }
 0x129   : > { %v1163_v17 = vsel %vm1160_vm5, %v1161_v6, %v1162_v12  ;;  %v1062_v28 = vrot.slane %v1036_v24, 4  ;;  %v1629_v29 = vpop.f32.mrb[30].mxu1 }
 0x12a   : > { %v1174_v21 = vadd.f32 %v1163_v17, %v1072_v19  ;;  %v1039_v31 = vpop.f32.mrb[31].mxu1 }
 0x12b   : > { %v1063_v35 = vsel %vm957_vm3, %v1060_v15, %v1062_v28  ;;  %v1064_v36 = vrot.slane %v1039_v31, 4 }
 0x12c   : > { %v1638_v20 = vpop.f32.mrb[28].mxu0  ;;  %v1073_v37 = vadd.f32 %v1063_v35, %v972_v48 }
 0x12d   : > { %v1137_v23 = vpop.f32.mrb[29].mxu0  ;;  %v1168_v25 = vrot.slane %v1638_v20, 5  ;;  %v1065_v40 = vsel %vm957_vm3, %v1062_v28, %v1064_v36  ;;  %v1067_v41 = vsel %vm957_vm3, %v1064_v36, %v1066_v34 }
 0x12e   : > { %v1164_v26 = vrot.slane %v1137_v23, 5  ;;  %v1639_v27 = vpop.f32.mrb[30].mxu0  ;;  %v1074_v42 = vadd.f32 %v1065_v40, %v973_v3  ;;  %v1075_v43 = vadd.f32 %v1067_v41, %v974_v8 }
 0x12f   : > { %v1140_v30 = vpop.f32.mrb[31].mxu0  ;;  %v1644_v45 = vpop.f32.mrb[32].mxu1 }
 0x130   : > { %v1165_v32 = vsel %vm1160_vm5, %v1162_v12, %v1164_v26  ;;  %v1166_v33 = vrot.slane %v1140_v30, 5  ;;  %v1225_v49 = vpop.f32.mrb[33].mxu1  ;;  %v1263_v51 = vrot.slane %v1644_v45, 6 }
 0x131   : > { %v1175_v44 = vadd.f32 %v1165_v32, %v1073_v37  ;;  %v1645_v50 = vpop.f32.mrb[34].mxu1 }
 0x132   : > { %v1167_v38 = vsel %vm1160_vm5, %v1164_v26, %v1166_v33  ;;  %v1169_v39 = vsel %vm1160_vm5, %v1166_v33, %v1168_v25  ;;  %v1264_v52 = vrot.slane %v1645_v50, 6  ;;  %v1227_v48 = vpop.f32.mrb[35].mxu1 }
 0x133   : > { %v1176_v46 = vadd.f32 %v1167_v38, %v1074_v42  ;;  %v1177_v47 = vadd.f32 %v1169_v39, %v1075_v43 }
 0x134   : > { %v1265_v53 = vsel %vm1262_vm6, %v1263_v51, %v1264_v52 }
 0x135   : > { %v1276_v54 = vadd.f32 %v1265_v53, %v1174_v21 }
 0x137   : > { %v1648_v55 = vpop.f32.mrb[36].mxu1  ;;  %v1295_v0 = vadd.f32 %v1483_v57, %v1276_v54 }
 0x138   : > { %v1239_v56 = vpop.f32.mrb[37].mxu1  ;;  %v1270_v61 = vrot.slane %v1648_v55, 6 }
 0x139   : > { %v1266_v58 = vrot.slane %v1239_v56, 6  ;;  %v1649_v59 = vpop.f32.mrb[38].mxu1  ;;  %v1299_v7 = vmax.f32 %v1295_v0, 0.0 }
 0x13a   : > { %v1242_v60 = vpop.f32.mrb[39].mxu1 }
 0x13b   : > { %v1267_v62 = vsel %vm1262_vm6, %v1264_v52, %v1266_v58  ;;  %v1268_v63 = vrot.slane %v1242_v60, 6 }
 0x13c   : > { %v1277_v1 = vadd.f32 %v1267_v62, %v1175_v44 }
 0x13d   : > { %v1269_v2 = vsel %vm1262_vm6, %v1266_v58, %v1268_v63  ;;  %v1271_v3 = vsel %vm1262_vm6, %v1268_v63, %v1270_v61 }
 0x13e   : > { %v1296_v4 = vadd.f32 %v1483_v57, %v1277_v1  ;;  %v1278_v5 = vadd.f32 %v1269_v2, %v1176_v46  ;;  %v1279_v6 = vadd.f32 %v1271_v3, %v1177_v47 }
 0x140   : > { %v1300_v8 = vmax.f32 %v1296_v4, 0.0  ;;  %v1297_v9 = vadd.f32 %v1483_v57, %v1278_v5  ;;  %v1298_v10 = vadd.f32 %v1483_v57, %v1279_v6 }
 0x142   : > { %v1498_v11 = vpack.c.bf16 %v1300_v8, %v1299_v7  ;;  %v1301_v12 = vmax.f32 %v1297_v9, 0.0  ;;  %v1302_v13 = vmax.f32 %v1298_v10, 0.0 }
 0x144   : > { %1499 = vst [vmem:[%s1735_s8] sm:$0xff] %v1498_v11   ;;  %v1503_v14 = vpack.c.bf16 %v1302_v13, %v1301_v12 }
 0x146   : > { %1505 = vst [vmem:[%s1735_s8 + $0x8] sm:$0xff] %v1503_v14  }
 0x147 PF: > { %s15_s18 = sadd.s32 1, %s1686_s18  }
 0x148   : > { %p12_p4 = scmp.ge.s32.totalorder %s15_s18, 9  }
 0x14a   :  { %14 = sbr.rel (!%p12_p4) target bundleno = 1 (0x1), region = 126 }
 0x151   :  { %1345 = vsyncmov [#allocation3] }
 0x154   :  { %s1346_s7 = vpop.sfrf %1345 }
 0x155   :  { %p1490_p5 = scmp.ne.s32.totalorder %s1346_s7, 0 }
 0x157   :  { %1350 = shalt.err (%p1490_p5)  }

</bundles_post_ra>
